<compile_context>
chip_gen: v7x
topology: tpu7x:2x2x1
jax: 0.10.0
libtpu: 0.0.40
codegen_flags: <defaults>
</compile_context>

<pallas_src>
import functools

import jax
import jax.numpy as jnp
from jax.experimental import pallas as pl
from jax.experimental.pallas import tpu as pltpu


def make_simple_kernel(bx, by):
    """Kernel body closed over the static batch sizes."""

    def kernel(x_ref, y_ref, w_ref, b_ref, out_ref):
        # x_ref : (bx, S, D_in)      whole array in VMEM
        # y_ref : (by, S, D_in)      whole array in VMEM
        # w_ref : (D_in, D_out_pad)  fused lin1+lin2 weight (lane-padded)
        # b_ref : (1, D_out_pad)     fused bias (lane-padded)
        # out_ref: (S, D_out_pad)    lane-dense store; sliced in wrapper
        w = w_ref[...]

        # torch.max(o1, dim=0)[0]: fold the max into the per-batch matmul loop
        # so only one (S, D_out_pad) accumulator is live at a time.
        m1 = jnp.dot(x_ref[0], w, preferred_element_type=jnp.float32)
        for b in range(1, bx):
            m1 = jnp.maximum(
                m1, jnp.dot(x_ref[b], w, preferred_element_type=jnp.float32))

        m2 = jnp.dot(y_ref[0], w, preferred_element_type=jnp.float32)
        for b in range(1, by):
            m2 = jnp.maximum(
                m2, jnp.dot(y_ref[b], w, preferred_element_type=jnp.float32))

        # Bias is constant over the batch dim, so it commutes with the max:
        # max_b(x_b @ W + bias) = max_b(x_b @ W) + bias  ->  add it once here.
        out_ref[...] = m1 + m2 + 2.0 * b_ref[...]

    return kernel


def make_simple_forward(w1, b1, w2, b2):
    """Precompute the fused (lin1 o lin2) weight/bias once and return a jitted
    forward(x, y) that runs a single no-grid Pallas kernel."""
    D_in = w1.shape[1]
    D_out = w2.shape[0]
    D_out_pad = ((D_out + 127) // 128) * 128  # lane-dense output (16 -> 128)

    # --- algebraic fusion of the two bias-only Linear layers (init time) ----
    w1t = jnp.transpose(w1).astype(jnp.float32)            # (D_in, H)
    w2t = jnp.transpose(w2).astype(jnp.float32)            # (H, D_out)
    W = jnp.dot(w1t, w2t)                                   # (D_in, D_out)
    bias = jnp.dot(b1.astype(jnp.float32), w2t) + b2.astype(jnp.float32)

    W_p = jnp.zeros((D_in, D_out_pad), jnp.float32).at[:, :D_out].set(W)
    b_p = jnp.zeros((1, D_out_pad), jnp.float32).at[:, :D_out].set(bias)

    @jax.jit
    def forward(x, y):
        Bx, S, _ = x.shape
        By = y.shape[0]

        cost = pl.CostEstimate(
            flops=2 * (Bx + By) * S * D_in * D_out_pad,
            transcendentals=0,
            bytes_accessed=4 * (x.size + y.size + W_p.size + b_p.size
                                + S * D_out_pad),
        )

        out_padded = pl.pallas_call(
            make_simple_kernel(Bx, By),
            out_shape=jax.ShapeDtypeStruct((S, D_out_pad), jnp.float32),
            # No grid: everything (<300 KB) fits whole in VMEM; a grid would
            # only add per-step overhead at these shapes.
            in_specs=[pl.BlockSpec(memory_space=pltpu.MemorySpace.VMEM)] * 4,
            out_specs=pl.BlockSpec(memory_space=pltpu.MemorySpace.VMEM),
            cost_estimate=cost,
        )(x.astype(jnp.float32), y.astype(jnp.float32), W_p, b_p)

        return out_padded[:, :D_out]

    return forward


if __name__ == "__main__":
    # Shapes implied by the module's test tensors: x=(4,50,10), y=(5,50,10),
    # input_dim=10; pick hid_dim=32, out_dim=16.
    Bx, By, S, D_IN, HID, D_OUT = 4, 5, 50, 10, 32, 16

    key = jax.random.PRNGKey(0)
    kx, ky, kw1, kb1, kw2, kb2 = jax.random.split(key, 6)

    x = jax.random.normal(kx, (Bx, S, D_IN), dtype=jnp.float32)
    y = jax.random.normal(ky, (By, S, D_IN), dtype=jnp.float32)

    # Deterministic parameter init (PyTorch Linear-style uniform bounds).
    bound1 = 1.0 / (D_IN ** 0.5)
    w1 = jax.random.uniform(kw1, (HID, D_IN), minval=-bound1, maxval=bound1,
                            dtype=jnp.float32)
    b1 = jax.random.uniform(kb1, (HID,), minval=-bound1, maxval=bound1,
                            dtype=jnp.float32)
    bound2 = 1.0 / (HID ** 0.5)
    w2 = jax.random.uniform(kw2, (D_OUT, HID), minval=-bound2, maxval=bound2,
                            dtype=jnp.float32)
    b2 = jax.random.uniform(kb2, (D_OUT,), minval=-bound2, maxval=bound2,
                            dtype=jnp.float32)

    simple_forward = make_simple_forward(w1, b1, w2, b2)

    out = simple_forward(x, y)
    out = jax.block_until_ready(out)

    # sanity check against the un-fused plain-JAX reference
    def ref(inp):
        h = jnp.einsum("bsd,hd->bsh", inp, w1) + b1
        return jnp.einsum("bsh,oh->bso", h, w2) + b2

    expected = jnp.max(ref(x), axis=0) + jnp.max(ref(y), axis=0)
    assert out.shape == (S, D_OUT)
    assert jnp.allclose(out, expected, atol=1e-4, rtol=1e-4)

    print("KERNEL_OK")
</pallas_src>

<mosaic_0001>
module attributes {stable_mosaic.version = 11 : i64} {
  func.func @kernel(%arg0: memref<4x50x10xf32, #tpu.memory_space<vmem>>, %arg1: memref<5x50x10xf32, #tpu.memory_space<vmem>>, %arg2: memref<10x128xf32, #tpu.memory_space<vmem>>, %arg3: memref<1x128xf32, #tpu.memory_space<vmem>>, %arg4: memref<50x128xf32, #tpu.memory_space<vmem>>) attributes {dimension_semantics = [], scalar_prefetch = 0 : i64, scratch_operands = 0 : i64, tpu.core_type = #tpu.core_type<tc>} {
    %c0 = arith.constant 0 : index
    %c0_0 = arith.constant 0 : index
    %0 = vector.load %arg2[%c0, %c0_0] : memref<10x128xf32, #tpu.memory_space<vmem>>, vector<10x128xf32>
    %c0_1 = arith.constant 0 : index
    %c0_2 = arith.constant 0 : index
    %c0_3 = arith.constant 0 : index
    %1 = vector.load %arg0[%c0_1, %c0_2, %c0_3] : memref<4x50x10xf32, #tpu.memory_space<vmem>>, vector<1x50x10xf32>
    %2 = vector.shape_cast %1 : vector<1x50x10xf32> to vector<50x10xf32>
    %cst = arith.constant dense<0.000000e+00> : vector<50x128xf32>
    %3 = tpu.matmul %2, %0, %cst {dimension_numbers = #tpu.dot_dimension_numbers<[1], [0], [0], [1], [0, 0, 1, 1], [], []>} : vector<50x10xf32>, vector<10x128xf32>, vector<50x128xf32> -> vector<50x128xf32>
    %c1 = arith.constant 1 : index
    %c0_4 = arith.constant 0 : index
    %c0_5 = arith.constant 0 : index
    %4 = vector.load %arg0[%c1, %c0_4, %c0_5] : memref<4x50x10xf32, #tpu.memory_space<vmem>>, vector<1x50x10xf32>
    %5 = vector.shape_cast %4 : vector<1x50x10xf32> to vector<50x10xf32>
    %cst_6 = arith.constant dense<0.000000e+00> : vector<50x128xf32>
    %6 = tpu.matmul %5, %0, %cst_6 {dimension_numbers = #tpu.dot_dimension_numbers<[1], [0], [0], [1], [0, 0, 1, 1], [], []>} : vector<50x10xf32>, vector<10x128xf32>, vector<50x128xf32> -> vector<50x128xf32>
    %7 = arith.maximumf %3, %6 : vector<50x128xf32>
    %c2 = arith.constant 2 : index
    %c0_7 = arith.constant 0 : index
    %c0_8 = arith.constant 0 : index
    %8 = vector.load %arg0[%c2, %c0_7, %c0_8] : memref<4x50x10xf32, #tpu.memory_space<vmem>>, vector<1x50x10xf32>
    %9 = vector.shape_cast %8 : vector<1x50x10xf32> to vector<50x10xf32>
    %cst_9 = arith.constant dense<0.000000e+00> : vector<50x128xf32>
    %10 = tpu.matmul %9, %0, %cst_9 {dimension_numbers = #tpu.dot_dimension_numbers<[1], [0], [0], [1], [0, 0, 1, 1], [], []>} : vector<50x10xf32>, vector<10x128xf32>, vector<50x128xf32> -> vector<50x128xf32>
    %11 = arith.maximumf %7, %10 : vector<50x128xf32>
    %c3 = arith.constant 3 : index
    %c0_10 = arith.constant 0 : index
    %c0_11 = arith.constant 0 : index
    %12 = vector.load %arg0[%c3, %c0_10, %c0_11] : memref<4x50x10xf32, #tpu.memory_space<vmem>>, vector<1x50x10xf32>
    %13 = vector.shape_cast %12 : vector<1x50x10xf32> to vector<50x10xf32>
    %cst_12 = arith.constant dense<0.000000e+00> : vector<50x128xf32>
    %14 = tpu.matmul %13, %0, %cst_12 {dimension_numbers = #tpu.dot_dimension_numbers<[1], [0], [0], [1], [0, 0, 1, 1], [], []>} : vector<50x10xf32>, vector<10x128xf32>, vector<50x128xf32> -> vector<50x128xf32>
    %15 = arith.maximumf %11, %14 : vector<50x128xf32>
    %c0_13 = arith.constant 0 : index
    %c0_14 = arith.constant 0 : index
    %c0_15 = arith.constant 0 : index
    %16 = vector.load %arg1[%c0_13, %c0_14, %c0_15] : memref<5x50x10xf32, #tpu.memory_space<vmem>>, vector<1x50x10xf32>
    %17 = vector.shape_cast %16 : vector<1x50x10xf32> to vector<50x10xf32>
    %cst_16 = arith.constant dense<0.000000e+00> : vector<50x128xf32>
    %18 = tpu.matmul %17, %0, %cst_16 {dimension_numbers = #tpu.dot_dimension_numbers<[1], [0], [0], [1], [0, 0, 1, 1], [], []>} : vector<50x10xf32>, vector<10x128xf32>, vector<50x128xf32> -> vector<50x128xf32>
    %c1_17 = arith.constant 1 : index
    %c0_18 = arith.constant 0 : index
    %c0_19 = arith.constant 0 : index
    %19 = vector.load %arg1[%c1_17, %c0_18, %c0_19] : memref<5x50x10xf32, #tpu.memory_space<vmem>>, vector<1x50x10xf32>
    %20 = vector.shape_cast %19 : vector<1x50x10xf32> to vector<50x10xf32>
    %cst_20 = arith.constant dense<0.000000e+00> : vector<50x128xf32>
    %21 = tpu.matmul %20, %0, %cst_20 {dimension_numbers = #tpu.dot_dimension_numbers<[1], [0], [0], [1], [0, 0, 1, 1], [], []>} : vector<50x10xf32>, vector<10x128xf32>, vector<50x128xf32> -> vector<50x128xf32>
    %22 = arith.maximumf %18, %21 : vector<50x128xf32>
    %c2_21 = arith.constant 2 : index
    %c0_22 = arith.constant 0 : index
    %c0_23 = arith.constant 0 : index
    %23 = vector.load %arg1[%c2_21, %c0_22, %c0_23] : memref<5x50x10xf32, #tpu.memory_space<vmem>>, vector<1x50x10xf32>
    %24 = vector.shape_cast %23 : vector<1x50x10xf32> to vector<50x10xf32>
    %cst_24 = arith.constant dense<0.000000e+00> : vector<50x128xf32>
    %25 = tpu.matmul %24, %0, %cst_24 {dimension_numbers = #tpu.dot_dimension_numbers<[1], [0], [0], [1], [0, 0, 1, 1], [], []>} : vector<50x10xf32>, vector<10x128xf32>, vector<50x128xf32> -> vector<50x128xf32>
    %26 = arith.maximumf %22, %25 : vector<50x128xf32>
    %c3_25 = arith.constant 3 : index
    %c0_26 = arith.constant 0 : index
    %c0_27 = arith.constant 0 : index
    %27 = vector.load %arg1[%c3_25, %c0_26, %c0_27] : memref<5x50x10xf32, #tpu.memory_space<vmem>>, vector<1x50x10xf32>
    %28 = vector.shape_cast %27 : vector<1x50x10xf32> to vector<50x10xf32>
    %cst_28 = arith.constant dense<0.000000e+00> : vector<50x128xf32>
    %29 = tpu.matmul %28, %0, %cst_28 {dimension_numbers = #tpu.dot_dimension_numbers<[1], [0], [0], [1], [0, 0, 1, 1], [], []>} : vector<50x10xf32>, vector<10x128xf32>, vector<50x128xf32> -> vector<50x128xf32>
    %30 = arith.maximumf %26, %29 : vector<50x128xf32>
    %c4 = arith.constant 4 : index
    %c0_29 = arith.constant 0 : index
    %c0_30 = arith.constant 0 : index
    %31 = vector.load %arg1[%c4, %c0_29, %c0_30] : memref<5x50x10xf32, #tpu.memory_space<vmem>>, vector<1x50x10xf32>
    %32 = vector.shape_cast %31 : vector<1x50x10xf32> to vector<50x10xf32>
    %cst_31 = arith.constant dense<0.000000e+00> : vector<50x128xf32>
    %33 = tpu.matmul %32, %0, %cst_31 {dimension_numbers = #tpu.dot_dimension_numbers<[1], [0], [0], [1], [0, 0, 1, 1], [], []>} : vector<50x10xf32>, vector<10x128xf32>, vector<50x128xf32> -> vector<50x128xf32>
    %34 = arith.maximumf %30, %33 : vector<50x128xf32>
    %35 = arith.addf %15, %34 : vector<50x128xf32>
    %c0_32 = arith.constant 0 : index
    %c0_33 = arith.constant 0 : index
    %36 = vector.load %arg3[%c0_32, %c0_33] : memref<1x128xf32, #tpu.memory_space<vmem>>, vector<1x128xf32>
    %cst_34 = arith.constant 2.000000e+00 : f32
    %37 = vector.broadcast %cst_34 : f32 to vector<1x128xf32>
    %38 = arith.mulf %37, %36 : vector<1x128xf32>
    %39 = vector.broadcast %38 : vector<1x128xf32> to vector<50x128xf32>
    %40 = arith.addf %35, %39 : vector<50x128xf32>
    %c0_35 = arith.constant 0 : index
    %c0_36 = arith.constant 0 : index
    %41 = vector.load %arg4[%c0_35, %c0_36] : memref<50x128xf32, #tpu.memory_space<vmem>>, vector<50x128xf32>
    tpu.vector_store %arg4[%c0_35, %c0_36], %40 {strides = array<i32>} : memref<50x128xf32, #tpu.memory_space<vmem>>, vector<50x128xf32>,
    return
  }
}

</mosaic_0001>

<bundles_post_ra>
// kernel: forward.1
= control target key start
LH: loop header
LB: loop body
LE: loop exit
PB: predicated region body
PF: predicated region fallthrough
CT: control target
= control target key end

     0   :  { %vm48_vm0 = vcmask 1041408   ;;  %v1734_v0 = vmov 0.0|0.0   ;;  %vm1735_vm1 = vmmov 1   ;;  %vm1736_vm3 = vmmov 0   ;;  %s2286_s2 = inlined_call_operand.vmem [shape: f32[10,128], index: 2, kind: input, shape index: {}]   ;;  %s2287_s0 = inlined_call_operand.vmem [shape: f32[4,50,10], index: 0, kind: input, shape index: {}]   ;;  %s2288_s1 = inlined_call_operand.vmem [shape: f32[5,50,10], index: 1, kind: input, shape index: {}]   ;;  %s2289_s3 = inlined_call_operand.vmem [shape: f32[1,128], index: 3, kind: input, shape index: {}]   ;;  %s2290_s4 = inlined_call_operand.vmem [shape: f32[50,128], index: 4, kind: output, shape index: {}]  }
   0x1   :  { %1692 = vmatprep.subr.bf16.mxu0 %v1734_v0  ;;  %1728 = vmatprep.subr.bf16.mxu1 %v1734_v0  ;;  %v17_v1 = vld [vmem:[%s2286_s2] sm:$0xff]  ;;  %v18_v2 = vld [vmem:[%s2286_s2 + $0x8] sm:$0x3]  ;;  %vm1771_vm2 = vmpackc.low %vm48_vm0, %vm1735_vm1  ;;  %v1737_v5 = vmov 0.0   ;;  %vm26_vm4 = vcmask 80896  }
   0x2   :  { %v1775_v4 = vpack.c.bf16 %v18_v2, %v17_v1  ;;  %1471 = vmatprep.mubr.msk.f32.mxu0 %vm1736_vm3, %v1737_v5  ;;  %1483 = vmatprep.mubr.msk.f32.mxu1 %vm1736_vm3, %v1737_v5  ;;  %v19_v6 = vld [vmem:[%s2287_s0] sm:$0xff]  ;;  %v20_v8 = vld [vmem:[%s2287_s0 + $0x8] sm:$0xff]  ;;  %v21_v10 = vld [vmem:[%s2287_s0 + $0x10] sm:$0xff] }
   0x3   :  { %v23_v7 = vld [vmem:[%s2287_s0 + $0x20] sm:$0xff]  ;;  %v24_v9 = vld [vmem:[%s2287_s0 + $0x28] sm:$0xff]  ;;  %v25_v11 = vld [vmem:[%s2287_s0 + $0x30] sm:$0x3] }
   0x4   :  { %1695 = vmatpush3.bf16.msk.msra.mxu0 %vm1771_vm2, %v1775_v4  ;;  %1729 = vmatpush3.bf16.msk.msra.mxu1 %vm1771_vm2, %v1775_v4  ;;  %v22_v12 = vld [vmem:[%s2287_s0 + $0x18] sm:$0xff]  ;;  %v1274_v14 = vld [vmem:[%s2287_s0 + $0x40] sm:$0xff]  ;;  %v1288_v15 = vld [vmem:[%s2287_s0 + $0x70] sm:$0xff] }
   0x5   :  { %1700 = vmatprep.subr.bf16.mxu0 %v1734_v0  ;;  %1696 = vmatprep.subr.bf16.mxu1 %v1734_v0  ;;  %v1273_v13 = vld [vmem:[%s2287_s0 + $0x38] sm:$0xff]  ;;  %v1275_v16 = vld [vmem:[%s2287_s0 + $0x48] sm:$0xff]  ;;  %v1276_v18 = vld [vmem:[%s2287_s0 + $0x50] sm:$0xff] }
   0x6   :  { %v1289_v17 = vld [vmem:[%s2287_s0 + $0x78] sm:$0xff]  ;;  %v1290_v19 = vld [vmem:[%s2287_s0 + $0x80] sm:$0xff]  ;;  %v1291_v21 = vld [vmem:[%s2287_s0 + $0x88] sm:$0xff] }
   0x7   :  { %1472 = vmatmul.mubr.msk.f32.vlgmr.msra.gmra.mrb[0].mxu0 %vm26_vm4, %v19_v6  ;;  %1484 = vmatmul.mubr.msk.f32.vlgmr.msra.gmra.mrb[0].mxu1 %vm26_vm4, %v23_v7  ;;  %v1277_v20 = vld [vmem:[%s2287_s0 + $0x58] sm:$0xff]  ;;  %v1278_v22 = vld [vmem:[%s2287_s0 + $0x60] sm:$0xff]  ;;  %v1292_v23 = vld [vmem:[%s2287_s0 + $0x90] sm:$0xff] }
   0x8   :  { %1703 = vmatpush3.bf16.msk.msra.mxu0 %vm1771_vm2, %v1775_v4  ;;  %1474 = vmatprep.mubr.msk.f32.mxu0 %vm1736_vm3, %v1737_v5  ;;  %v1279_v24 = vld [vmem:[%s2287_s0 + $0x68] sm:$0x3]  ;;  %v1293_v25 = vld [vmem:[%s2287_s0 + $0x98] sm:$0xff]  ;;  %v1294_v26 = vld [vmem:[%s2287_s0 + $0xa0] sm:$0x3] }
   0x9   :  { %1486 = vmatprep.mubr.msk.f32.mxu1 %vm1736_vm3, %v1737_v5  ;;  %1699 = vmatpush3.bf16.msk.msra.mxu1 %vm1771_vm2, %v1775_v4  ;;  %v1303_v27 = vld [vmem:[%s2287_s0 + $0xa8] sm:$0xff]  ;;  %v1304_v28 = vld [vmem:[%s2287_s0 + $0xb0] sm:$0xff]  ;;  %v560_v29 = vld [vmem:[%s2288_s1] sm:$0xff] }
   0xa   :  { %1704 = vmatprep.subr.bf16.mxu1 %v1734_v0  ;;  %1708 = vmatprep.subr.bf16.mxu0 %v1734_v0  ;;  %v1305_v30 = vld [vmem:[%s2287_s0 + $0xb8] sm:$0xff]  ;;  %v561_v31 = vld [vmem:[%s2288_s1 + $0x8] sm:$0xff]  ;;  %v1306_v32 = vld [vmem:[%s2287_s0 + $0xc0] sm:$0xff] }
   0xb   :  { %1475 = vmatmul.mubr.msk.f32.gmra.mrb[2].mxu0 %vm26_vm4, %v20_v8  ;;  %1487 = vmatmul.mubr.msk.f32.gmra.mrb[2].mxu1 %vm26_vm4, %v24_v9  ;;  %v562_v33 = vld [vmem:[%s2288_s1 + $0x10] sm:$0xff]  ;;  %v1307_v34 = vld [vmem:[%s2287_s0 + $0xc8] sm:$0xff]  ;;  %v563_v35 = vld [vmem:[%s2288_s1 + $0x18] sm:$0xff] }
   0xc   :  { %1477 = vmatprep.mubr.msk.f32.mxu0 %vm1736_vm3, %v1737_v5  ;;  %1489 = vmatprep.mubr.msk.f32.mxu1 %vm1736_vm3, %v1737_v5  ;;  %v1308_v36 = vld [vmem:[%s2287_s0 + $0xd0] sm:$0xff]  ;;  %v564_v37 = vld [vmem:[%s2288_s1 + $0x20] sm:$0xff]  ;;  %v1309_v38 = vld [vmem:[%s2287_s0 + $0xd8] sm:$0x3] }
   0xd   :  { %v565_v39 = vld [vmem:[%s2288_s1 + $0x28] sm:$0xff]  ;;  %v566_v40 = vld [vmem:[%s2288_s1 + $0x30] sm:$0x3]  ;;  %v1326_v41 = vld [vmem:[%s2288_s1 + $0x38] sm:$0xff] }
   0xe   :  { %v1327_v42 = vld [vmem:[%s2288_s1 + $0x40] sm:$0xff]  ;;  %v1341_v43 = vld [vmem:[%s2288_s1 + $0x70] sm:$0xff]  ;;  %v1328_v44 = vld [vmem:[%s2288_s1 + $0x48] sm:$0xff] }
   0xf   :  { %1478 = vmatmul.mubr.msk.f32.gmra.mrb[4].mxu0 %vm26_vm4, %v21_v10  ;;  %1490 = vmatmul.mubr.msk.f32.gmra.mrb[4].mxu1 %vm26_vm4, %v25_v11  ;;  %v1342_v45 = vld [vmem:[%s2288_s1 + $0x78] sm:$0xff]  ;;  %v1329_v46 = vld [vmem:[%s2288_s1 + $0x50] sm:$0xff]  ;;  %v1343_v47 = vld [vmem:[%s2288_s1 + $0x80] sm:$0xff] }
  0x10   :  { %1480 = vmatprep.mubr.msk.f32.mxu0 %vm1736_vm3, %v1737_v5  ;;  %1496 = vmatprep.mubr.msk.f32.mxu1 %vm1736_vm3, %v1737_v5  ;;  %v1330_v48 = vld [vmem:[%s2288_s1 + $0x58] sm:$0xff]  ;;  %v1344_v49 = vld [vmem:[%s2288_s1 + $0x88] sm:$0xff]  ;;  %v1331_v50 = vld [vmem:[%s2288_s1 + $0x60] sm:$0xff] }
  0x11   :  { %v1345_v51 = vld [vmem:[%s2288_s1 + $0x90] sm:$0xff]  ;;  %v1332_v52 = vld [vmem:[%s2288_s1 + $0x68] sm:$0x3]  ;;  %v1346_v53 = vld [vmem:[%s2288_s1 + $0x98] sm:$0xff] }
  0x12   :  { %v1347_v54 = vld [vmem:[%s2288_s1 + $0xa0] sm:$0x3]  ;;  %v1356_v55 = vld [vmem:[%s2288_s1 + $0xa8] sm:$0xff]  ;;  %v1357_v56 = vld [vmem:[%s2288_s1 + $0xb0] sm:$0xff] }
  0x13   :  { %1481 = vmatmul.mubr.msk.f32.gmra.mrb[6].mxu0 %vm26_vm4, %v22_v12  ;;  %1497 = vmatmul.mubr.msk.f32.vlgmr.msra.gmra.mrb[6].mxu1 %vm26_vm4, %v1273_v13  ;;  %v1371_v57 = vld [vmem:[%s2288_s1 + $0xe0] sm:$0xff]  ;;  %v1358_v58 = vld [vmem:[%s2288_s1 + $0xb8] sm:$0xff]  ;;  %v1372_v59 = vld [vmem:[%s2288_s1 + $0xe8] sm:$0xff] }
  0x14   :  { %1499 = vmatprep.mubr.msk.f32.mxu1 %vm1736_vm3, %v1737_v5  ;;  %1521 = vmatprep.mubr.msk.f32.mxu0 %vm1736_vm3, %v1737_v5  ;;  %v1359_v60 = vld [vmem:[%s2288_s1 + $0xc0] sm:$0xff]  ;;  %v1373_v61 = vld [vmem:[%s2288_s1 + $0xf0] sm:$0xff]  ;;  %v1360_v62 = vld [vmem:[%s2288_s1 + $0xc8] sm:$0xff] }
  0x15   :  { %1707 = vmatpush3.bf16.msk.msra.mxu1 %vm1771_vm2, %v1775_v4  ;;  %v1374_v63 = vld [vmem:[%s2288_s1 + $0xf8] sm:$0xff]  ;;  %v1375_v1 = vld [vmem:[%s2288_s1 + $0x100] sm:$0xff]  ;;  %v1376_v3 = vld [vmem:[%s2288_s1 + $0x108] sm:$0xff] }
  0x16   :  { %1712 = vmatprep.subr.bf16.mxu1 %v1734_v0  ;;  %v1362_v2 = vld [vmem:[%s2288_s1 + $0xd8] sm:$0x3] }
  0x17   :  { %1500 = vmatmul.mubr.msk.f32.gmra.mrb[8].mxu1 %vm26_vm4, %v1274_v14  ;;  %1522 = vmatmul.mubr.msk.f32.vlgmr.msra.gmra.mrb[8].mxu0 %vm26_vm4, %v1288_v15 }
  0x18   :  { %1711 = vmatpush3.bf16.msk.msra.mxu0 %vm1771_vm2, %v1775_v4  ;;  %1502 = vmatprep.mubr.msk.f32.mxu1 %vm1736_vm3, %v1737_v5 }
  0x19   :  { %1524 = vmatprep.mubr.msk.f32.mxu0 %vm1736_vm3, %v1737_v5  ;;  %1716 = vmatprep.subr.bf16.mxu0 %v1734_v0 }
  0x1b   :  { %1503 = vmatmul.mubr.msk.f32.gmra.mrb[10].mxu1 %vm26_vm4, %v1275_v16  ;;  %1525 = vmatmul.mubr.msk.f32.gmra.mrb[10].mxu0 %vm26_vm4, %v1289_v17 }
  0x1c   :  { %1505 = vmatprep.mubr.msk.f32.mxu1 %vm1736_vm3, %v1737_v5  ;;  %1527 = vmatprep.mubr.msk.f32.mxu0 %vm1736_vm3, %v1737_v5 }
  0x1f   :  { %1506 = vmatmul.mubr.msk.f32.gmra.mrb[12].mxu1 %vm26_vm4, %v1276_v18  ;;  %1528 = vmatmul.mubr.msk.f32.gmra.mrb[12].mxu0 %vm26_vm4, %v1290_v19 }
  0x20   :  { %1508 = vmatprep.mubr.msk.f32.mxu1 %vm1736_vm3, %v1737_v5  ;;  %1530 = vmatprep.mubr.msk.f32.mxu0 %vm1736_vm3, %v1737_v5 }
  0x23   :  { %1509 = vmatmul.mubr.msk.f32.gmra.mrb[14].mxu1 %vm26_vm4, %v1277_v20  ;;  %1531 = vmatmul.mubr.msk.f32.gmra.mrb[14].mxu0 %vm26_vm4, %v1291_v21 }
  0x24   :  { %1511 = vmatprep.mubr.msk.f32.mxu1 %vm1736_vm3, %v1737_v5  ;;  %1533 = vmatprep.mubr.msk.f32.mxu0 %vm1736_vm3, %v1737_v5 }
  0x27   :  { %1512 = vmatmul.mubr.msk.f32.gmra.mrb[16].mxu1 %vm26_vm4, %v1278_v22  ;;  %1534 = vmatmul.mubr.msk.f32.gmra.mrb[16].mxu0 %vm26_vm4, %v1292_v23 }
  0x28   :  { %1514 = vmatprep.mubr.msk.f32.mxu1 %vm1736_vm3, %v1737_v5  ;;  %1536 = vmatprep.mubr.msk.f32.mxu0 %vm1736_vm3, %v1737_v5 }
  0x2b   :  { %1515 = vmatmul.mubr.msk.f32.gmra.mrb[18].mxu1 %vm26_vm4, %v1279_v24  ;;  %1537 = vmatmul.mubr.msk.f32.gmra.mrb[18].mxu0 %vm26_vm4, %v1293_v25 }
  0x2c   :  { %1539 = vmatprep.mubr.msk.f32.mxu0 %vm1736_vm3, %v1737_v5  ;;  %1546 = vmatprep.mubr.msk.f32.mxu1 %vm1736_vm3, %v1737_v5 }
  0x2f   :  { %1540 = vmatmul.mubr.msk.f32.gmra.mrb[20].mxu0 %vm26_vm4, %v1294_v26  ;;  %1547 = vmatmul.mubr.msk.f32.vlgmr.msra.gmra.mrb[20].mxu1 %vm26_vm4, %v1303_v27 }
  0x30   :  { %1549 = vmatprep.mubr.msk.f32.mxu1 %vm1736_vm3, %v1737_v5  ;;  %1571 = vmatprep.mubr.msk.f32.mxu0 %vm1736_vm3, %v1737_v5 }
  0x31   :  { %1715 = vmatpush3.bf16.msk.msra.mxu1 %vm1771_vm2, %v1775_v4 }
  0x32   :  { %1720 = vmatprep.subr.bf16.mxu1 %v1734_v0 }
  0x33   :  { %1550 = vmatmul.mubr.msk.f32.gmra.mrb[22].mxu1 %vm26_vm4, %v1304_v28  ;;  %1572 = vmatmul.mubr.msk.f32.vlgmr.msra.gmra.mrb[22].mxu0 %vm26_vm4, %v560_v29 }
  0x34   :  { %1719 = vmatpush3.bf16.msk.msra.mxu0 %vm1771_vm2, %v1775_v4  ;;  %1552 = vmatprep.mubr.msk.f32.mxu1 %vm1736_vm3, %v1737_v5 }
  0x35   :  { %1574 = vmatprep.mubr.msk.f32.mxu0 %vm1736_vm3, %v1737_v5  ;;  %1724 = vmatprep.subr.bf16.mxu0 %v1734_v0  ;;  %v1361_v0 = vld [vmem:[%s2288_s1 + $0xd0] sm:$0xff] }
  0x37   :  { %1553 = vmatmul.mubr.msk.f32.gmra.mrb[24].mxu1 %vm26_vm4, %v1305_v30  ;;  %1575 = vmatmul.mubr.msk.f32.gmra.mrb[24].mxu0 %vm26_vm4, %v561_v31 }
  0x38   :  { %1555 = vmatprep.mubr.msk.f32.mxu1 %vm1736_vm3, %v1737_v5  ;;  %1577 = vmatprep.mubr.msk.f32.mxu0 %vm1736_vm3, %v1737_v5 }
  0x3b   :  { %1556 = vmatmul.mubr.msk.f32.gmra.mrb[26].mxu1 %vm26_vm4, %v1306_v32  ;;  %1578 = vmatmul.mubr.msk.f32.gmra.mrb[26].mxu0 %vm26_vm4, %v562_v33 }
  0x3c   :  { %1558 = vmatprep.mubr.msk.f32.mxu1 %vm1736_vm3, %v1737_v5  ;;  %1580 = vmatprep.mubr.msk.f32.mxu0 %vm1736_vm3, %v1737_v5 }
  0x3f   :  { %1559 = vmatmul.mubr.msk.f32.gmra.mrb[28].mxu1 %vm26_vm4, %v1307_v34  ;;  %1581 = vmatmul.mubr.msk.f32.gmra.mrb[28].mxu0 %vm26_vm4, %v563_v35 }
  0x40   :  { %1561 = vmatprep.mubr.msk.f32.mxu1 %vm1736_vm3, %v1737_v5  ;;  %1583 = vmatprep.mubr.msk.f32.mxu0 %vm1736_vm3, %v1737_v5 }
  0x43   :  { %1562 = vmatmul.mubr.msk.f32.gmra.mrb[30].mxu1 %vm26_vm4, %v1308_v36  ;;  %1584 = vmatmul.mubr.msk.f32.gmra.mrb[30].mxu0 %vm26_vm4, %v564_v37 }
  0x44   :  { %1564 = vmatprep.mubr.msk.f32.mxu1 %vm1736_vm3, %v1737_v5  ;;  %1586 = vmatprep.mubr.msk.f32.mxu0 %vm1736_vm3, %v1737_v5 }
  0x47   :  { %1565 = vmatmul.mubr.msk.f32.gmra.mrb[32].mxu1 %vm26_vm4, %v1309_v38  ;;  %1587 = vmatmul.mubr.msk.f32.gmra.mrb[32].mxu0 %vm26_vm4, %v565_v39 }
  0x48   :  { %1589 = vmatprep.mubr.msk.f32.mxu0 %vm1736_vm3, %v1737_v5  ;;  %1596 = vmatprep.mubr.msk.f32.mxu1 %vm1736_vm3, %v1737_v5 }
  0x4b   :  { %1590 = vmatmul.mubr.msk.f32.gmra.mrb[34].mxu0 %vm26_vm4, %v566_v40  ;;  %1597 = vmatmul.mubr.msk.f32.vlgmr.msra.gmra.mrb[34].mxu1 %vm26_vm4, %v1326_v41 }
  0x4c   :  { %1599 = vmatprep.mubr.msk.f32.mxu1 %vm1736_vm3, %v1737_v5  ;;  %1621 = vmatprep.mubr.msk.f32.mxu0 %vm1736_vm3, %v1737_v5 }
  0x4d   :  { %1723 = vmatpush3.bf16.msk.msra.mxu1 %vm1771_vm2, %v1775_v4 }
  0x4f   :  { %1600 = vmatmul.mubr.msk.f32.gmra.mrb[36].mxu1 %vm26_vm4, %v1327_v42  ;;  %1622 = vmatmul.mubr.msk.f32.vlgmr.msra.gmra.mrb[36].mxu0 %vm26_vm4, %v1341_v43 }
  0x50   :  { %1727 = vmatpush3.bf16.msk.msra.mxu0 %vm1771_vm2, %v1775_v4  ;;  %1602 = vmatprep.mubr.msk.f32.mxu1 %vm1736_vm3, %v1737_v5  ;;  %v1377_v4 = vld [vmem:[%s2288_s1 + $0x110] sm:$0x3] }
  0x51   :  { %1624 = vmatprep.mubr.msk.f32.mxu0 %vm1736_vm3, %v1737_v5 }
  0x53   :  { %1603 = vmatmul.mubr.msk.f32.gmra.mrb[38].mxu1 %vm26_vm4, %v1328_v44  ;;  %1625 = vmatmul.mubr.msk.f32.gmra.mrb[38].mxu0 %vm26_vm4, %v1342_v45 }
  0x54   :  { %1605 = vmatprep.mubr.msk.f32.mxu1 %vm1736_vm3, %v1737_v5  ;;  %1627 = vmatprep.mubr.msk.f32.mxu0 %vm1736_vm3, %v1737_v5 }
  0x57   :  { %1606 = vmatmul.mubr.msk.f32.gmra.mrb[40].mxu1 %vm26_vm4, %v1329_v46  ;;  %1628 = vmatmul.mubr.msk.f32.gmra.mrb[40].mxu0 %vm26_vm4, %v1343_v47 }
  0x58   :  { %1608 = vmatprep.mubr.msk.f32.mxu1 %vm1736_vm3, %v1737_v5  ;;  %1630 = vmatprep.mubr.msk.f32.mxu0 %vm1736_vm3, %v1737_v5 }
  0x5b   :  { %1609 = vmatmul.mubr.msk.f32.gmra.mrb[42].mxu1 %vm26_vm4, %v1330_v48  ;;  %1631 = vmatmul.mubr.msk.f32.gmra.mrb[42].mxu0 %vm26_vm4, %v1344_v49 }
  0x5c   :  { %1611 = vmatprep.mubr.msk.f32.mxu1 %vm1736_vm3, %v1737_v5  ;;  %1633 = vmatprep.mubr.msk.f32.mxu0 %vm1736_vm3, %v1737_v5 }
  0x5f   :  { %1612 = vmatmul.mubr.msk.f32.gmra.mrb[44].mxu1 %vm26_vm4, %v1331_v50  ;;  %1634 = vmatmul.mubr.msk.f32.gmra.mrb[44].mxu0 %vm26_vm4, %v1345_v51 }
  0x60   :  { %1614 = vmatprep.mubr.msk.f32.mxu1 %vm1736_vm3, %v1737_v5  ;;  %1636 = vmatprep.mubr.msk.f32.mxu0 %vm1736_vm3, %v1737_v5 }
  0x63   :  { %1615 = vmatmul.mubr.msk.f32.gmra.mrb[46].mxu1 %vm26_vm4, %v1332_v52  ;;  %1637 = vmatmul.mubr.msk.f32.gmra.mrb[46].mxu0 %vm26_vm4, %v1346_v53 }
  0x64   :  { %1639 = vmatprep.mubr.msk.f32.mxu0 %vm1736_vm3, %v1737_v5  ;;  %1646 = vmatprep.mubr.msk.f32.mxu1 %vm1736_vm3, %v1737_v5 }
  0x67   :  { %1640 = vmatmul.mubr.msk.f32.gmra.mrb[48].mxu0 %vm26_vm4, %v1347_v54  ;;  %1647 = vmatmul.mubr.msk.f32.vlgmr.msra.gmra.mrb[48].mxu1 %vm26_vm4, %v1356_v55 }
  0x68   :  { %1649 = vmatprep.mubr.msk.f32.mxu1 %vm1736_vm3, %v1737_v5  ;;  %1671 = vmatprep.mubr.msk.f32.mxu0 %vm1736_vm3, %v1737_v5 }
  0x6b   :  { %1650 = vmatmul.mubr.msk.f32.gmra.mrb[50].mxu1 %vm26_vm4, %v1357_v56  ;;  %1672 = vmatmul.mubr.msk.f32.vlgmr.msra.gmra.mrb[50].mxu0 %vm26_vm4, %v1371_v57 }
  0x6c   :  { %1652 = vmatprep.mubr.msk.f32.mxu1 %vm1736_vm3, %v1737_v5  ;;  %1674 = vmatprep.mubr.msk.f32.mxu0 %vm1736_vm3, %v1737_v5 }
  0x6f   :  { %1653 = vmatmul.mubr.msk.f32.gmra.mrb[52].mxu1 %vm26_vm4, %v1358_v58  ;;  %1675 = vmatmul.mubr.msk.f32.gmra.mrb[52].mxu0 %vm26_vm4, %v1372_v59 }
  0x70   :  { %1655 = vmatprep.mubr.msk.f32.mxu1 %vm1736_vm3, %v1737_v5  ;;  %1677 = vmatprep.mubr.msk.f32.mxu0 %vm1736_vm3, %v1737_v5 }
  0x73   :  { %1656 = vmatmul.mubr.msk.f32.gmra.mrb[54].mxu1 %vm26_vm4, %v1359_v60  ;;  %1678 = vmatmul.mubr.msk.f32.gmra.mrb[54].mxu0 %vm26_vm4, %v1373_v61 }
  0x74   :  { %1658 = vmatprep.mubr.msk.f32.mxu1 %vm1736_vm3, %v1737_v5  ;;  %1680 = vmatprep.mubr.msk.f32.mxu0 %vm1736_vm3, %v1737_v5 }
  0x77   :  { %1659 = vmatmul.mubr.msk.f32.gmra.mrb[56].mxu1 %vm26_vm4, %v1360_v62  ;;  %1681 = vmatmul.mubr.msk.f32.gmra.mrb[56].mxu0 %vm26_vm4, %v1374_v63 }
  0x78   :  { %1661 = vmatprep.mubr.msk.f32.mxu1 %vm1736_vm3, %v1737_v5  ;;  %1683 = vmatprep.mubr.msk.f32.mxu0 %vm1736_vm3, %v1737_v5 }
  0x7b   :  { %1662 = vmatmul.mubr.msk.f32.gmra.mrb[58].mxu1 %vm26_vm4, %v1361_v0  ;;  %1684 = vmatmul.mubr.msk.f32.gmra.mrb[58].mxu0 %vm26_vm4, %v1375_v1 }
  0x7c   :  { %1664 = vmatprep.mubr.msk.f32.mxu1 %vm1736_vm3, %v1737_v5  ;;  %1686 = vmatprep.mubr.msk.f32.mxu0 %vm1736_vm3, %v1737_v5 }
  0x7f   :  { %1665 = vmatmul.mubr.msk.f32.gmra.mrb[60].mxu1 %vm26_vm4, %v1362_v2  ;;  %1687 = vmatmul.mubr.msk.f32.gmra.mrb[60].mxu0 %vm26_vm4, %v1376_v3 }
  0x80   :  { %1689 = vmatprep.mubr.msk.f32.mxu0 %vm1736_vm3, %v1737_v5 }
  0x83   :  { %1690 = vmatmul.mubr.msk.f32.gmra.mrb[62].mxu0 %vm26_vm4, %v1377_v4 }
  0xda   :  { %v118_v6 = vpop.f32.mrb[0].mxu0  ;;  %v138_v7 = vpop.f32.mrb[0].mxu1 }
  0xdb   :  { %v1473_v8 = vpop.f32.mrb[1].mxu0  ;;  %v1485_v9 = vpop.f32.mrb[1].mxu1 }
  0xde   :  { %v123_v10 = vpop.f32.mrb[2].mxu0  ;;  %v143_v11 = vpop.f32.mrb[2].mxu1 }
  0xdf   :  { %v1476_v12 = vpop.f32.mrb[3].mxu0  ;;  %v1488_v13 = vpop.f32.mrb[3].mxu1 }
  0xe2   :  { %v128_v14 = vpop.f32.mrb[4].mxu0  ;;  %v148_v15 = vpop.f32.mrb[4].mxu1 }
  0xe3   :  { %v1479_v16 = vpop.f32.mrb[5].mxu0  ;;  %v1491_v17 = vpop.f32.mrb[5].mxu1 }
  0xe6   :  { %v133_v18 = vpop.f32.mrb[6].mxu0  ;;  %v247_v5 = vpop.f32.mrb[6].mxu1 }
  0xe7   :  { %v281_v19 = vmax.f32 %v118_v6, %v247_v5  ;;  %v1482_v20 = vpop.f32.mrb[7].mxu0  ;;  %v1498_v21 = vpop.f32.mrb[7].mxu1 }
  0xea   :  { %v252_v22 = vpop.f32.mrb[8].mxu1  ;;  %v383_v23 = vpop.f32.mrb[8].mxu0 }
  0xeb   :  { %v282_v24 = vmax.f32 %v123_v10, %v252_v22  ;;  %v2193_v25 = vmax.f32 %v281_v19, %v383_v23  ;;  %v1523_v26 = vpop.f32.mrb[9].mxu0  ;;  %v1501_v27 = vpop.f32.mrb[9].mxu1 }
  0xee   :  { %v257_v28 = vpop.f32.mrb[10].mxu1  ;;  %v388_v29 = vpop.f32.mrb[10].mxu0 }
  0xef   :  { %v283_v30 = vmax.f32 %v128_v14, %v257_v28  ;;  %v2195_v31 = vmax.f32 %v282_v24, %v388_v29  ;;  %v1526_v32 = vpop.f32.mrb[11].mxu0  ;;  %v1504_v33 = vpop.f32.mrb[11].mxu1 }
  0xf2   :  { %v262_v34 = vpop.f32.mrb[12].mxu1  ;;  %v393_v35 = vpop.f32.mrb[12].mxu0 }
  0xf3   :  { %v284_v36 = vmax.f32 %v133_v18, %v262_v34  ;;  %v2197_v37 = vmax.f32 %v283_v30, %v393_v35  ;;  %v1529_v38 = vpop.f32.mrb[13].mxu0  ;;  %v1507_v39 = vpop.f32.mrb[13].mxu1 }
  0xf6   :  { %v267_v40 = vpop.f32.mrb[14].mxu1  ;;  %v398_v41 = vpop.f32.mrb[14].mxu0 }
  0xf7   :  { %v285_v42 = vmax.f32 %v138_v7, %v267_v40  ;;  %v2199_v43 = vmax.f32 %v284_v36, %v398_v41  ;;  %v1532_v44 = vpop.f32.mrb[15].mxu0  ;;  %v1510_v45 = vpop.f32.mrb[15].mxu1 }
  0xfa   :  { %v272_v46 = vpop.f32.mrb[16].mxu1  ;;  %v403_v47 = vpop.f32.mrb[16].mxu0 }
  0xfb   :  { %v286_v48 = vmax.f32 %v143_v11, %v272_v46  ;;  %v2201_v49 = vmax.f32 %v285_v42, %v403_v47  ;;  %v1535_v50 = vpop.f32.mrb[17].mxu0  ;;  %v1513_v51 = vpop.f32.mrb[17].mxu1 }
  0xfe   :  { %v277_v52 = vpop.f32.mrb[18].mxu1  ;;  %v408_v53 = vpop.f32.mrb[18].mxu0 }
  0xff   :  { %v287_v54 = vmax.f32 %v148_v15, %v277_v52  ;;  %v2203_v55 = vmax.f32 %v286_v48, %v408_v53  ;;  %v1538_v56 = vpop.f32.mrb[19].mxu0  ;;  %v1516_v57 = vpop.f32.mrb[19].mxu1 }
 0x102   :  { %v413_v58 = vpop.f32.mrb[20].mxu0  ;;  %v2205_v59 = vpop.f32.mrb[20].mxu1 }
 0x103   :  { %v2207_v60 = vmax.f32 %v287_v54, %v413_v58  ;;  %v553_v61 = vmax.f32 %v2193_v25, %v2205_v59  ;;  %v1541_v62 = vpop.f32.mrb[21].mxu0  ;;  %v1548_v63 = vpop.f32.mrb[21].mxu1 }
 0x106   :  { %v2211_v0 = vpop.f32.mrb[22].mxu1  ;;  %v654_v1 = vpop.f32.mrb[22].mxu0 }
 0x107   :  { %v554_v2 = vmax.f32 %v2195_v31, %v2211_v0  ;;  %v1573_v3 = vpop.f32.mrb[23].mxu0  ;;  %v1551_v4 = vpop.f32.mrb[23].mxu1 }
 0x10a   :  { %v2215_v6 = vpop.f32.mrb[24].mxu1  ;;  %v659_v7 = vpop.f32.mrb[24].mxu0 }
 0x10b   :  { %v555_v8 = vmax.f32 %v2197_v37, %v2215_v6  ;;  %v1576_v9 = vpop.f32.mrb[25].mxu0  ;;  %v1554_v10 = vpop.f32.mrb[25].mxu1 }
 0x10e   :  { %v2219_v11 = vpop.f32.mrb[26].mxu1  ;;  %v664_v12 = vpop.f32.mrb[26].mxu0 }
 0x10f   :  { %v556_v13 = vmax.f32 %v2199_v43, %v2219_v11  ;;  %v1579_v14 = vpop.f32.mrb[27].mxu0  ;;  %v1557_v15 = vpop.f32.mrb[27].mxu1 }
 0x112   :  { %v2223_v16 = vpop.f32.mrb[28].mxu1  ;;  %v669_v17 = vpop.f32.mrb[28].mxu0 }
 0x113   :  { %v557_v18 = vmax.f32 %v2201_v49, %v2223_v16  ;;  %v1582_v5 = vpop.f32.mrb[29].mxu0  ;;  %v1560_v19 = vpop.f32.mrb[29].mxu1 }
 0x114   :  { %v1242_v19 = vlaneseq }
 0x116   :  { %v2227_v20 = vpop.f32.mrb[30].mxu1  ;;  %v674_v21 = vpop.f32.mrb[30].mxu0 }
 0x117   :  { %v558_v22 = vmax.f32 %v2203_v55, %v2227_v20  ;;  %v1585_v23 = vpop.f32.mrb[31].mxu0  ;;  %v1563_v24 = vpop.f32.mrb[31].mxu1 }
 0x11a   :  { %v2231_v26 = vpop.f32.mrb[32].mxu1  ;;  %v679_v27 = vpop.f32.mrb[32].mxu0 }
 0x11b   :  { %v559_v28 = vmax.f32 %v2207_v60, %v2231_v26  ;;  %v1588_v29 = vpop.f32.mrb[33].mxu0  ;;  %v1566_v30 = vpop.f32.mrb[33].mxu1 }
 0x11e   :  { %v684_v32 = vpop.f32.mrb[34].mxu0  ;;  %v783_v33 = vpop.f32.mrb[34].mxu1 }
 0x11f   :  { %v817_v34 = vmax.f32 %v654_v1, %v783_v33  ;;  %v1591_v35 = vpop.f32.mrb[35].mxu0  ;;  %v1598_v36 = vpop.f32.mrb[35].mxu1 }
 0x122   :  { %v788_v38 = vpop.f32.mrb[36].mxu1  ;;  %v919_v39 = vpop.f32.mrb[36].mxu0 }
 0x123   :  { %v818_v40 = vmax.f32 %v659_v7, %v788_v38  ;;  %v953_v41 = vmax.f32 %v817_v34, %v919_v39  ;;  %v1623_v42 = vpop.f32.mrb[37].mxu0  ;;  %v1601_v44 = vpop.f32.mrb[37].mxu1  ;;  %v1243_v34 = vshrl.u32 %v1242_v19, 7 }
 0x125   :  { %v1244_v44 = vsub.s32 0, %v1243_v34 }
 0x126   :  { %v793_v45 = vpop.f32.mrb[38].mxu1  ;;  %v924_v46 = vpop.f32.mrb[38].mxu0 }
 0x127   :  { %v819_v47 = vmax.f32 %v664_v12, %v793_v45  ;;  %v954_v48 = vmax.f32 %v818_v40, %v924_v46  ;;  %v1626_v50 = vpop.f32.mrb[39].mxu0  ;;  %v1604_v51 = vpop.f32.mrb[39].mxu1 }
 0x12a   :  { %v798_v52 = vpop.f32.mrb[40].mxu1  ;;  %v929_v53 = vpop.f32.mrb[40].mxu0 }
 0x12b   :  { %v820_v54 = vmax.f32 %v669_v17, %v798_v52  ;;  %v955_v56 = vmax.f32 %v819_v47, %v929_v53  ;;  %v1629_v57 = vpop.f32.mrb[41].mxu0  ;;  %v1607_v58 = vpop.f32.mrb[41].mxu1 }
 0x12e   :  { %v803_v62 = vpop.f32.mrb[42].mxu1  ;;  %v934_v63 = vpop.f32.mrb[42].mxu0 }
 0x12f   :  { %v821_v1 = vmax.f32 %v674_v21, %v803_v62  ;;  %v956_v3 = vmax.f32 %v820_v54, %v934_v63  ;;  %v1632_v4 = vpop.f32.mrb[43].mxu0  ;;  %v1610_v7 = vpop.f32.mrb[43].mxu1  ;;  %v1239_v21 = vld [vmem:[%s2289_s3] sm:$0x1] }
 0x130   :  { %v1240_v42 = vmul.f32 2.0, %v1239_v21 }
 0x132   :  { %v808_v9 = vpop.f32.mrb[44].mxu1  ;;  %v939_v10 = vpop.f32.mrb[44].mxu0  ;;  %v1245_v50 = vrot.slane %v1240_v42, %v1244_v44 }
 0x133   :  { %v822_v14 = vmax.f32 %v679_v27, %v808_v9  ;;  %v957_v15 = vmax.f32 %v821_v1, %v939_v10  ;;  %v1635_v12 = vpop.f32.mrb[45].mxu0  ;;  %v1613_v5 = vpop.f32.mrb[45].mxu1 }
 0x136   :  { %v813_v23 = vpop.f32.mrb[46].mxu1  ;;  %v944_v24 = vpop.f32.mrb[46].mxu0 }
 0x137   :  { %v823_v29 = vmax.f32 %v684_v32, %v813_v23  ;;  %v2235_v17 = vmax.f32 %v822_v14, %v944_v24  ;;  %v1638_v30 = vpop.f32.mrb[47].mxu0  ;;  %v1616_v33 = vpop.f32.mrb[47].mxu1 }
 0x13a   :  { %v949_v35 = vpop.f32.mrb[48].mxu0  ;;  %v1055_v36 = vpop.f32.mrb[48].mxu1 }
 0x13b   :  { %v2240_v38 = vmax.f32 %v823_v29, %v949_v35  ;;  %v1089_v27 = vmax.f32 %v953_v41, %v1055_v36  ;;  %v1641_v39 = vpop.f32.mrb[49].mxu0  ;;  %v1648_v40 = vpop.f32.mrb[49].mxu1 }
 0x13e   :  { %v1060_v45 = vpop.f32.mrb[50].mxu1  ;;  %v1191_v32 = vpop.f32.mrb[50].mxu0 }
 0x13f   :  { %v1090_v46 = vmax.f32 %v954_v48, %v1060_v45  ;;  %v1225_v47 = vmax.f32 %v1089_v27, %v1191_v32  ;;  %v1673_v51 = vpop.f32.mrb[51].mxu0  ;;  %v1651_v52 = vpop.f32.mrb[51].mxu1 }
 0x141   :  { %v1232_v53 = vadd.f32 %v1225_v47, %v553_v61 }
 0x142   :  { %v1065_v54 = vpop.f32.mrb[52].mxu1  ;;  %v1196_v57 = vpop.f32.mrb[52].mxu0 }
 0x143   :  { %v1247_v58 = vadd.f32 %v1245_v50, %v1232_v53  ;;  %v1091_v62 = vmax.f32 %v955_v56, %v1065_v54  ;;  %v1226_v41 = vmax.f32 %v1090_v46, %v1196_v57  ;;  %v1676_v63 = vpop.f32.mrb[53].mxu0  ;;  %v1654_v1 = vpop.f32.mrb[53].mxu1 }
 0x145   :  { %1254 = vst [vmem:[%s2290_s4] sm:$0xff] %v1247_v58  ;;  %v1233_v48 = vadd.f32 %v1226_v41, %v554_v2 }
 0x146   :  { %v1070_v4 = vpop.f32.mrb[54].mxu1  ;;  %v1201_v7 = vpop.f32.mrb[54].mxu0 }
 0x147   :  { %v1248_v9 = vadd.f32 %v1245_v50, %v1233_v48  ;;  %v1092_v25 = vmax.f32 %v956_v3, %v1070_v4  ;;  %v1227_v59 = vmax.f32 %v1091_v62, %v1201_v7  ;;  %v1679_v61 = vpop.f32.mrb[55].mxu0  ;;  %v1657_v10 = vpop.f32.mrb[55].mxu1 }
 0x149   :  { %1255 = vst [vmem:[%s2290_s4 + $0x8] sm:$0xff] %v1248_v9  ;;  %v1234_v56 = vadd.f32 %v1227_v59, %v555_v8 }
 0x14a   :  { %v1075_v14 = vpop.f32.mrb[56].mxu1  ;;  %v1206_v12 = vpop.f32.mrb[56].mxu0 }
 0x14b   :  { %v1249_v5 = vadd.f32 %v1245_v50, %v1234_v56  ;;  %v1093_v31 = vmax.f32 %v957_v15, %v1075_v14  ;;  %v1228_v0 = vmax.f32 %v1092_v25, %v1206_v12  ;;  %v1682_v2 = vpop.f32.mrb[57].mxu0  ;;  %v1660_v19 = vpop.f32.mrb[57].mxu1 }
 0x14d   :  { %1256 = vst [vmem:[%s2290_s4 + $0x10] sm:$0xff] %v1249_v5  ;;  %v1235_v3 = vadd.f32 %v1228_v0, %v556_v13 }
 0x14e   :  { %v1080_v23 = vpop.f32.mrb[58].mxu1  ;;  %v1211_v24 = vpop.f32.mrb[58].mxu0 }
 0x14f   :  { %v1250_v29 = vadd.f32 %v1245_v50, %v1235_v3  ;;  %v1094_v37 = vmax.f32 %v2235_v17, %v1080_v23  ;;  %v1229_v6 = vmax.f32 %v1093_v31, %v1211_v24  ;;  %v1685_v8 = vpop.f32.mrb[59].mxu0  ;;  %v1663_v30 = vpop.f32.mrb[59].mxu1 }
 0x151   :  { %1257 = vst [vmem:[%s2290_s4 + $0x18] sm:$0xff] %v1250_v29  ;;  %v1236_v15 = vadd.f32 %v1229_v6, %v557_v18 }
 0x152   :  { %v1085_v33 = vpop.f32.mrb[60].mxu1  ;;  %v1216_v34 = vpop.f32.mrb[60].mxu0 }
 0x153   :  { %v1251_v43 = vadd.f32 %v1245_v50, %v1236_v15  ;;  %v1095_v11 = vmax.f32 %v2240_v38, %v1085_v33  ;;  %v1230_v13 = vmax.f32 %v1094_v37, %v1216_v34  ;;  %v1688_v21 = vpop.f32.mrb[61].mxu0  ;;  %v1666_v35 = vpop.f32.mrb[61].mxu1 }
 0x155   :  { %1258 = vst [vmem:[%s2290_s4 + $0x20] sm:$0xff] %v1251_v43  ;;  %v1237_v17 = vadd.f32 %v1230_v13, %v558_v22 }
 0x156   :  { %v1221_v36 = vpop.f32.mrb[62].mxu0 }
 0x157   :  { %v1252_v27 = vadd.f32 %v1245_v50, %v1237_v17  ;;  %v1231_v49 = vmax.f32 %v1095_v11, %v1221_v36  ;;  %v1691_v16 = vpop.f32.mrb[63].mxu0 }
 0x159   :  { %1259 = vst [vmem:[%s2290_s4 + $0x28] sm:$0xff] %v1252_v27  ;;  %v1238_v18 = vadd.f32 %v1231_v49, %v559_v28 }
 0x15b   :  { %v1253_v38 = vadd.f32 %v1245_v50, %v1238_v18 }
 0x15d   :  { %1260 = vst [vmem:[%s2290_s4 + $0x30] sm:$0x3] %v1253_v38 }

</bundles_post_ra>
